<compile_context>
chip_gen: v5e
topology: v5e:2x2
jax: 0.10.0
libtpu: 0.0.40
codegen_flags: <defaults>
</compile_context>

<pallas_src>
import jax
import jax.numpy as jnp
from jax.experimental import pallas as pl
from jax.experimental.pallas import tpu as pltpu


def _decoder_kernel(lw_ref, hs_ref, w_ref, b_ref, o_ref, acc_ref):
    # lw_ref : (L,) f32        layer averaging weights (SMEM, read as scalars)
    # hs_ref : (1, 1, TS, H)   one llm-layer slab for this (batch, seq-tile)
    # w_ref  : (H, Opad) bf16  Linear weight (whole array resident in VMEM)
    # b_ref  : (1, Opad) f32   Linear bias   (whole array resident in VMEM)
    # o_ref  : (1, TS, Opad)   output slab for this (batch, seq-tile)
    # acc_ref: (TS, Opad) f32  running sum_l lw[l] * (hs_l @ W)
    l = pl.program_id(2)
    lw = lw_ref[l]  # scalar f32 read from SMEM (broadcast multiply runs on the VPU)

    hs = hs_ref[0, 0].astype(jnp.bfloat16)
    # bf16 MXU matmul every layer step; scale the small (TS, Opad) result,
    # not the (TS, H) slab.
    part = jnp.dot(hs, w_ref[...], preferred_element_type=jnp.float32) * lw

    @pl.when(l == 0)
    def _():
        acc_ref[...] = part          # direct store: no zero-init + read-modify-write

    @pl.when(l > 0)
    def _():
        acc_ref[...] += part

    @pl.when(l == pl.num_programs(2) - 1)
    def _():
        o_ref[...] = (acc_ref[...] + b_ref[...])[None].astype(o_ref.dtype)


def occamnet_layer_decoder(hidden_states, layer_weights, w, b,
                           num_llm_layers, layer_input_size, layer_output_size,
                           *, seq_tile=None):
    """hidden_states: [B, L_total, S, H] float32 or bfloat16
       layer_weights: [num_llm_layers] float32
       w: [H, O] float32 (O = layer_input_size * layer_output_size, Linear weight transposed)
       b: [O] float32
       returns: [B, S, layer_input_size, layer_output_size] float32
    """
    B, L_total, S, H = hidden_states.shape
    O = layer_input_size * layer_output_size
    L = num_llm_layers
    l_off = L_total - L  # static offset baked into the index_map (no HBM slice copy)

    # Lane-dense output: pad the Linear output dim up to a multiple of 128.
    O_pad = max(128, ((O + 127) // 128) * 128)
    w_p = w.astype(jnp.bfloat16)          # bf16 MXU operand
    b_p = b.astype(jnp.float32)
    if O_pad != O:
        w_p = jnp.pad(w_p, ((0, 0), (0, O_pad - O)))
        b_p = jnp.pad(b_p, ((0, O_pad - O),))
    b_p = b_p.reshape(1, O_pad)
    lw = layer_weights.astype(jnp.float32)

    # --- Generation-dependent VMEM limit and sequence tile -------------------
    vmem_cap = 128 * 1024 * 1024
    try:
        info = pltpu.get_tpu_info()
        cap = getattr(info, "vmem_capacity_bytes", None)
        if cap:
            vmem_cap = int(cap)
    except Exception:
        pass
    # Leave ~25% headroom for compiler scratch: ~48 MiB on v7x (64 MiB/TC),
    # ~96 MiB on v5e/v6e (128 MiB/TC).
    vmem_limit = max(32 * 1024 * 1024, min(100 * 1024 * 1024, (vmem_cap * 3) // 4))
    small_vmem = vmem_cap <= 64 * 1024 * 1024  # v7x-class TensorCore

    if seq_tile is None:
        seq_tile = 256 if small_vmem else 1024

    TS = min(seq_tile, S)
    if TS < S:
        TS = max(8, (TS // 8) * 8)

    hs_item = hidden_states.dtype.itemsize

    def _vmem_budget(ts):
        return (2 * ts * H * hs_item            # double-buffered hs slab
                + H * O_pad * 2 + O_pad * 4     # resident bf16 weight + f32 bias
                + ts * O_pad * 4                # f32 accumulator
                + 2 * ts * O_pad * 4)           # double-buffered output

    # Shrink the tile if the pipeline wouldn't fit comfortably.
    while TS > 8 and _vmem_budget(TS) > (3 * vmem_limit) // 4:
        new_ts = max(8, ((TS // 2) // 8) * 8)
        if new_ts == TS:
            break
        TS = new_ts

    # On v7x make sure both TensorCores get (B, seq-tile) work units.
    if small_vmem:
        while TS > 8 and B * ((S + TS - 1) // TS) < 4:
            new_ts = max(8, ((TS // 2) // 8) * 8)
            if new_ts == TS:
                break
            TS = new_ts

    grid = (B, pl.cdiv(S, TS), L)

    hs_bytes = B * L * S * H * hs_item
    cost = pl.CostEstimate(
        flops=2 * B * L * S * H * O_pad + 2 * B * L * S * O_pad,
        transcendentals=0,
        bytes_accessed=hs_bytes + H * O_pad * 2 + O_pad * 4 + B * S * O_pad * 4,
    )

    out_p = pl.pallas_call(
        _decoder_kernel,
        out_shape=jax.ShapeDtypeStruct((B, S, O_pad), jnp.float32),
        grid_spec=pltpu.PrefetchScalarGridSpec(
            num_scalar_prefetch=0,
            grid=grid,
            in_specs=[
                # layer weights: whole (L,) array in SMEM, read as scalars
                pl.BlockSpec(memory_space=pltpu.MemorySpace.SMEM),
                # hidden states: one layer slab per step; layer offset baked in
                pl.BlockSpec((1, 1, TS, H),
                             lambda bi, si, li: (bi, l_off + li, si, 0)),
                # Linear weight / bias: single-copy VMEM residents (no double buffering)
                pl.BlockSpec(memory_space=pltpu.MemorySpace.VMEM),
                pl.BlockSpec(memory_space=pltpu.MemorySpace.VMEM),
            ],
            out_specs=pl.BlockSpec((1, TS, O_pad),
                                   lambda bi, si, li: (bi, si, 0)),
            scratch_shapes=[pltpu.VMEM((TS, O_pad), jnp.float32)],
        ),
        compiler_params=pltpu.CompilerParams(
            dimension_semantics=("parallel", "parallel", "arbitrary"),
            vmem_limit_bytes=vmem_limit,
        ),
        cost_estimate=cost,
    )(lw, hidden_states, w_p, b_p)

    out = out_p[:, :, :O] if O_pad != O else out_p
    return out.reshape(B, S, layer_input_size, layer_output_size)


if __name__ == "__main__":
    # Small shapes consistent with the module.
    B = 2                 # batch
    L_total = 6           # total LLM layers present in hidden_states
    num_llm_layers = 4    # occamnet_config.num_llm_layers
    S = 8                 # sequence length
    H = 32                # llm_config.hidden_size
    layer_input_size = 4
    layer_output_size = 8
    O = layer_input_size * layer_output_size  # output_size of the Linear

    key = jax.random.PRNGKey(0)
    k_hs, k_w, k_b = jax.random.split(key, 3)

    hidden_states = jax.random.normal(k_hs, (B, L_total, S, H), dtype=jnp.float32)

    # Deterministic parameter init (encoding_layers == 1 path -> single Linear).
    w = jax.random.normal(k_w, (H, O), dtype=jnp.float32) * 0.02   # Linear weight (H, O)
    b = jax.random.normal(k_b, (O,), dtype=jnp.float32) * 0.02     # Linear bias
    layer_weights = jnp.ones((num_llm_layers,), dtype=jnp.float32) / num_llm_layers
    # TODO(synk): the encoding_layers > 1 (MLP with skip connections) branch is not
    # implemented; only the single-Linear branch is reproduced here.

    out = occamnet_layer_decoder(hidden_states, layer_weights, w, b,
                                 num_llm_layers, layer_input_size, layer_output_size)
    out = jax.block_until_ready(out)

    # Pure-JAX f32 reference for correctness (kernel uses bf16 MXU operands,
    # so tolerance is relaxed accordingly).
    hs_last = hidden_states[:, -num_llm_layers:, :, :]
    avg_ref = jnp.einsum('ijkl,j->ikl', hs_last, layer_weights)
    ref = (avg_ref @ w + b).reshape(B, S, layer_input_size, layer_output_size)
    assert out.shape == (B, S, layer_input_size, layer_output_size)
    assert jnp.allclose(out, ref, atol=2e-2, rtol=2e-2), \
        float(jnp.max(jnp.abs(out - ref)))

    print("KERNEL_OK")
</pallas_src>

<mosaic_0001>
module attributes {stable_mosaic.version = 11 : i64} {
  func.func @_decoder_kernel(%arg0: i32, %arg1: i32, %arg2: i32, %arg3: memref<4xf32, #tpu.memory_space<smem>>, %arg4: memref<1x1x8x32xf32, #tpu.memory_space<vmem>>, %arg5: memref<32x128xbf16, #tpu.memory_space<vmem>>, %arg6: memref<1x128xf32, #tpu.memory_space<vmem>>, %arg7: memref<1x8x128xf32, #tpu.memory_space<vmem>>, %arg8: memref<8x128xf32, #tpu.memory_space<vmem>>) attributes {dimension_semantics = [#tpu.dimension_semantics<parallel>, #tpu.dimension_semantics<parallel>, #tpu.dimension_semantics<arbitrary>], iteration_bounds = array<i64: 2, 1, 4>, scalar_prefetch = 0 : i64, scratch_operands = 1 : i64, tpu.core_type = #tpu.core_type<tc>, window_params = [{transform_indices = @transform_0, window_bounds = array<i64: 4>}, {transform_indices = @transform_1, window_bounds = array<i64: 1, 1, 8, 32>}, {pipeline_mode = #tpu.pipeline_mode<synchronous>, transform_indices = @transform_2, window_bounds = array<i64: 32, 128>}, {pipeline_mode = #tpu.pipeline_mode<synchronous>, transform_indices = @transform_3, window_bounds = array<i64: 1, 128>}, {transform_indices = @transform_4, window_bounds = array<i64: 1, 8, 128>}]} {
    %0 = arith.index_cast %arg2 : i32 to index
    %1 = memref.load %arg3[%0] : memref<4xf32, #tpu.memory_space<smem>>
    %c0 = arith.constant 0 : index
    %c0_0 = arith.constant 0 : index
    %c0_1 = arith.constant 0 : index
    %c0_2 = arith.constant 0 : index
    %2 = vector.load %arg4[%c0, %c0_0, %c0_1, %c0_2] : memref<1x1x8x32xf32, #tpu.memory_space<vmem>>, vector<1x1x8x32xf32>
    %3 = vector.shape_cast %2 : vector<1x1x8x32xf32> to vector<8x32xf32>
    %4 = arith.truncf %3 : vector<8x32xf32> to vector<8x32xbf16>
    %c0_3 = arith.constant 0 : index
    %c0_4 = arith.constant 0 : index
    %5 = vector.load %arg5[%c0_3, %c0_4] : memref<32x128xbf16, #tpu.memory_space<vmem>>, vector<32x128xbf16>
    %cst = arith.constant dense<0.000000e+00> : vector<8x128xf32>
    %6 = tpu.matmul %4, %5, %cst {dimension_numbers = #tpu.dot_dimension_numbers<[1], [0], [0], [1], [0, 0, 1, 1], [], []>} : vector<8x32xbf16>, vector<32x128xbf16>, vector<8x128xf32> -> vector<8x128xf32>
    %7 = vector.broadcast %1 : f32 to vector<8x128xf32>
    %8 = arith.mulf %6, %7 : vector<8x128xf32>
    %c0_i32 = arith.constant 0 : i32
    %9 = arith.cmpi eq, %arg2, %c0_i32 : i32
    %10 = arith.extui %9 : i1 to i32
    %c0_i32_5 = arith.constant 0 : i32
    %11 = arith.cmpi ne, %10, %c0_i32_5 : i32
    scf.if %11 {
      %c0_9 = arith.constant 0 : index
      %c0_10 = arith.constant 0 : index
      %18 = vector.load %arg8[%c0_9, %c0_10] : memref<8x128xf32, #tpu.memory_space<vmem>>, vector<8x128xf32>
      tpu.vector_store %arg8[%c0_9, %c0_10], %8 {strides = array<i32>} : memref<8x128xf32, #tpu.memory_space<vmem>>, vector<8x128xf32>,
    } else {
    }
    %c0_i32_6 = arith.constant 0 : i32
    %12 = arith.cmpi sgt, %arg2, %c0_i32_6 : i32
    %13 = arith.extui %12 : i1 to i32
    %c0_i32_7 = arith.constant 0 : i32
    %14 = arith.cmpi ne, %13, %c0_i32_7 : i32
    scf.if %14 {
      %c0_9 = arith.constant 0 : index
      %c0_10 = arith.constant 0 : index
      %18 = vector.load %arg8[%c0_9, %c0_10] : memref<8x128xf32, #tpu.memory_space<vmem>>, vector<8x128xf32>
      %19 = arith.addf %18, %8 : vector<8x128xf32>
      %c0_11 = arith.constant 0 : index
      %c0_12 = arith.constant 0 : index
      %20 = vector.load %arg8[%c0_11, %c0_12] : memref<8x128xf32, #tpu.memory_space<vmem>>, vector<8x128xf32>
      tpu.vector_store %arg8[%c0_11, %c0_12], %19 {strides = array<i32>} : memref<8x128xf32, #tpu.memory_space<vmem>>, vector<8x128xf32>,
    } else {
    }
    %c3_i32 = arith.constant 3 : i32
    %15 = arith.cmpi eq, %arg2, %c3_i32 : i32
    %16 = arith.extui %15 : i1 to i32
    %c0_i32_8 = arith.constant 0 : i32
    %17 = arith.cmpi ne, %16, %c0_i32_8 : i32
    scf.if %17 {
      %c0_9 = arith.constant 0 : index
      %c0_10 = arith.constant 0 : index
      %18 = vector.load %arg8[%c0_9, %c0_10] : memref<8x128xf32, #tpu.memory_space<vmem>>, vector<8x128xf32>
      %c0_11 = arith.constant 0 : index
      %c0_12 = arith.constant 0 : index
      %19 = vector.load %arg6[%c0_11, %c0_12] : memref<1x128xf32, #tpu.memory_space<vmem>>, vector<1x128xf32>
      %20 = vector.broadcast %19 : vector<1x128xf32> to vector<8x128xf32>
      %21 = arith.addf %18, %20 : vector<8x128xf32>
      %22 = vector.shape_cast %21 : vector<8x128xf32> to vector<1x8x128xf32>
      %c0_13 = arith.constant 0 : index
      %c0_14 = arith.constant 0 : index
      %c0_15 = arith.constant 0 : index
      %23 = vector.load %arg7[%c0_13, %c0_14, %c0_15] : memref<1x8x128xf32, #tpu.memory_space<vmem>>, vector<1x8x128xf32>
      tpu.vector_store %arg7[%c0_13, %c0_14, %c0_15], %22 {strides = array<i32>} : memref<1x8x128xf32, #tpu.memory_space<vmem>>, vector<1x8x128xf32>,
    } else {
    }
    return
  }
  func.func @transform_0(%arg0: i32, %arg1: i32, %arg2: i32) -> i32 {
    %c0_i32 = arith.constant 0 : i32
    %c0_i32_0 = arith.constant 0 : i32
    return %c0_i32 : i32
  }
  func.func @transform_1(%arg0: i32, %arg1: i32, %arg2: i32) -> (i32, i32, i32, i32) {
    %c2_i32 = arith.constant 2 : i32
    %0 = arith.addi %c2_i32, %arg2 : i32
    %c0_i32 = arith.constant 0 : i32
    %c0_i32_0 = arith.constant 0 : i32
    return %arg0, %0, %arg1, %c0_i32 : i32, i32, i32, i32
  }
  func.func @transform_2(%arg0: i32, %arg1: i32, %arg2: i32) -> (i32, i32) {
    %c0_i32 = arith.constant 0 : i32
    %c0_i32_0 = arith.constant 0 : i32
    %c0_i32_1 = arith.constant 0 : i32
    return %c0_i32, %c0_i32_0 : i32, i32
  }
  func.func @transform_3(%arg0: i32, %arg1: i32, %arg2: i32) -> (i32, i32) {
    %c0_i32 = arith.constant 0 : i32
    %c0_i32_0 = arith.constant 0 : i32
    %c0_i32_1 = arith.constant 0 : i32
    return %c0_i32, %c0_i32_0 : i32, i32
  }
  func.func @transform_4(%arg0: i32, %arg1: i32, %arg2: i32) -> (i32, i32, i32) {
    %c0_i32 = arith.constant 0 : i32
    %c0_i32_0 = arith.constant 0 : i32
    return %arg0, %arg1, %c0_i32 : i32, i32, i32
  }
}

</mosaic_0001>

<bundles_post_ra>
// kernel: tpu_custom_call.1
= control target key start
LH: loop header
LB: loop body
LE: loop exit
PB: predicated region body
PF: predicated region fallthrough
CT: control target
= control target key end

     0   :  { %s1075_s0 = inlined_call_operand.hbm [shape: f32[4], index: 0, kind: input, shape index: {}]   ;;  %s1076_s1 = inlined_call_operand.hbm [shape: f32[2,6,8,32], index: 1, kind: input, shape index: {}]   ;;  %s1077_s2 = inlined_call_operand.hbm [shape: bf16[32,128], index: 2, kind: input, shape index: {}]   ;;  %s1078_s3 = inlined_call_operand.vmem [shape: f32[1,128], index: 3, kind: input, shape index: {}]   ;;  %s1079_s4 = inlined_call_operand.hbm [shape: f32[2,8,128], index: 4, kind: output, shape index: {}]  }
   0x1   :  { %1087 = sst [smem:[#allocation21_spill]] %s1075_s0 }
   0x2   :  { %1088 = sst [smem:[#allocation22_spill]] %s1077_s2 }
   0x3   :  { %1089 = sst [smem:[#allocation23_spill]] %s1078_s3 }
   0x4   :  { %1090 = sst [smem:[#allocation24_spill]] %s1079_s4 }
   0x5   :  { %9 = vsyncpa [#allocation6], 0 }
   0x6   :  { %10 = vsyncpa [#allocation4], 0 }
   0x7   :  { %12 = vsyncpa [#allocation4 + $0x1], 0 }
   0x8   :  { %13 = vsyncpa [#allocation9], 0 }
   0x9   :  { %14 = vsyncpa [#allocation5], 0 }
   0xa   :  { %16 = vsyncpa [#allocation5 + $0x1], 0  ;;  %s861_s15 = smov 0   ;;  %s863_s16 = smov 0  }
   0xb   :  { %s865_s17 = smov 0   ;;  %s867_s18 = smov 0  }
   0xc   :  { %s869_s19 = smov 0   ;;  %s871_s20 = smov 0  }
   0xd   :  { %s873_s21 = smov 0   ;;  %s875_s22 = smov 0  }
   0xe   :  { %s877_s23 = smov 0   ;;  %s879_s24 = smov 0  }
   0xf   :  { %s881_s25 = smov 0  }
  0x10 LB: > { %1091 = sst [smem:[#allocation15_spill]] %s790_s15  ;;  %s468_s26 = sadd.s32 4294967295, %s830_s25   ;;  %s830_s25 = sphi %s881_s25, %s22_s25   ;;  %s826_s24 = sphi %s879_s24, %s1125_s24   ;;  %s822_s23 = sphi %s877_s23, %s1124_s23   ;;  %s818_s22 = sphi %s875_s22, %s1123_s22   ;;  %s814_s21 = sphi %s873_s21, %s1122_s21   ;;  %s810_s20 = sphi %s871_s20, %s1121_s20   ;;  %s806_s19 = sphi %s869_s19, %s1120_s19   ;;  %s802_s18 = sphi %s867_s18, %s1119_s18   ;;  %s798_s17 = sphi %s865_s17, %s1118_s17   ;;  %s794_s16 = sphi %s863_s16, %s1117_s16   ;;  %s790_s15 = sphi %s861_s15, %s1116_s15  }
  0x11   : > { %1092 = sst [smem:[#allocation16_spill]] %s814_s21  ;;  %s469_s27 = sadd.s32 4294967294, %s830_s25  }
  0x12   : > { %1093 = sst [smem:[#allocation17_spill]] %s818_s22  ;;  %p88_p0 = scmp.ne.s32.totalorder %s806_s19, %s802_s18 }
  0x13   : > { %p917_p1 = scmp.eq.s32.totalorder %s468_s26, 0  ;;  %p155_p2 = scmp.ne.s32.totalorder %s798_s17, %s794_s16 }
  0x14   : > { %p156_p4 = scmp.eq.s32.totalorder %s468_s26, 7  ;;  %p161_p5 = scmp.ne.s32.totalorder %s794_s16, %s790_s15 }
  0x15   : > { %p926_p3 = por %p917_p1, %p88_p0  ;;  %p162_p6 = scmp.eq.s32.totalorder %s469_s27, 7 }
  0x16   : > { %p932_p7 = por %p156_p4, %p155_p2  ;;  %p470_p8 = scmp.ge.s32.totalorder %s830_s25, 1 }
  0x17   : > { %p937_p9 = por %p162_p6, %p161_p5  ;;  %p169_p10 = scmp.lt.s32.totalorder %s830_s25, 9 }
  0x18   : > { %s1096_s5 = scalar_select %p932_p7, 1, 0 }
  0x19   : > { %s1098_s6 = scalar_select %p937_p9, 1, 0 }
  0x1a   : > { %1097 = sst [smem:[#allocation18_spill]] %s1096_s5  ;;  %p945_p11 = pnand %p470_p8, %p169_p10 }
  0x1b   : > { %1099 = sst [smem:[#allocation19_spill]] %s1098_s6  ;;  %s832_s14 = smov [#allocation8]  }
  0x1c   : > { %s1100_s0 = sld [smem:[#allocation21_spill]]  ;;  %p511_p12 = pneg %p945_p11 }
  0x1d   : > { %s1102_s2 = sld [smem:[#allocation22_spill]]  ;;  %s192_s18 = sshll.u32 %s832_s14, 4  ;;  %s193_s18 = int_to_ptr.vmem [resolvable:$true] %s192_s18 }
  0x1e   : > { %p512_p13 = pnand %p511_p12, %p917_p1  ;;  %s833_s26 = smov [#allocation3]  }
  0x1f   : > { %s834_s27 = smov 64   ;;  %s835_s7 = smov 4  }
  0x20   : > { %s34_s8 = sadd.s32 1, %s822_s23  ;;  %s41_s11 = sadd.s32 1, %s826_s24 }
  0x21   : > { %p35_p0 = scmp.ge.s32.totalorder %s34_s8, 4  ;;  %s66_s12 = sadd.s32 2, %s822_s23 }
  0x22   : > { %s181_s9 = sshll.u32 %s1100_s0, 4  ;;  %s75_s29 = sadd.s32 1, %s810_s20  ;;  %s182_s9 = int_to_ptr.hbm [resolvable:$true] %s181_s9 }
  0x23   : > { %s190_s13 = sshll.u32 %s1102_s2, 4  ;;  %p82_p2 = scmp.ne.s32.totalorder %s810_s20, %s806_s19  ;;  %s191_s13 = int_to_ptr.hbm [resolvable:$true] %s190_s13 }
  0x24   : > { %514 = dma.hbm_to_smem (!%p512_p13), %s182_s9, 16, %s833_s26, [#allocation6]  }
  0x25   : > { %517 = dma.hbm_to_vmem [thread:$0]  (!%p512_p13), %s191_s13, 256, %s193_s18, [#allocation9], %s834_s27, %s834_s27, %s835_s7  }
  0x26   : > { %s1127_s8 = smov (%p35_p0, %s34_s8), 0  ;;  %s1129_s11 = smov (!%p35_p0, %s41_s11), %s826_s24 }
  0x27   : > { %1103 = sst [smem:[#allocation20_spill]] %s1127_s8  ;;  %s67_s9 = sadd.s32 2, %s1127_s8 }
  0x28   : > { %p83_p4 = scmp.eq.s32.totalorder %s830_s25, 0  ;;  %p43_p5 = scmp.ge.s32.totalorder %s1129_s11, 2 }
  0x29   : > { %s69_s13 = ssub.s32 %s66_s12, %s67_s9  ;;  %p528_p8 = scmp.lt.s32.totalorder %s830_s25, 8 }
  0x2a   : > { %p967_p6 = por %p83_p4, %p82_p2  ;;  %s1131_s11 = smov (%p43_p5, %s1129_s11), 0 }
  0x2b   : > { %s209_s18 = sand.u32 1, %s810_s20   ;;  %s389_s26 = smul.u32 6, %s826_s24 }
  0x2c   : > { %s68_s27 = ssub.s32 %s826_s24, %s1131_s11  ;;  %s474_s0 = sshll.u32 %s209_s18, 3 }
  0x2d   : > { %s70_s7 = sor.u32 %s69_s13, %s68_s27  ;;  %p143_p10 = scmp.eq.s32.totalorder %s68_s27, 0 }
  0x2e   : > { %p73_p12 = scmp.eq.s32.totalorder %s70_s7, 0  ;;  %s1105_s2 = sadd.s32 1, %s798_s17 }
  0x2f   : > { %s981_s8 = scalar_select %p143_p10, %s798_s17, %s1105_s2  }
  0x30   : > { %s984_s12 = scalar_select %p73_p12, %s810_s20, %s75_s29  }
  0x31   : > { %s390_s9 = sadd.s32 %s822_s23, %s389_s26  ;;  %s213_s15 = scalar_lea.vmem [#allocation7], %s474_s0 }
  0x32   : > { %s475_s6 = sshll.u32 %s390_s9, 3  ;;  %s225_s4 = sshll.u32 %s213_s15, 4  ;;  %s226_s4 = int_to_ptr.vmem [resolvable:$true] %s225_s4 }
  0x33   : > { %s392_s3 = scalar_lea.hbm %s1076_s1, %s475_s6  ;;  %p519_p13 = pnand %p528_p8, %p967_p6 }
  0x34   : > { %s393_s21 = scalar_lea.hbm %s392_s3, 16  ;;  %s210_s27 = scalar_lea.sflag [#allocation4], %s209_s18 }
  0x35   : > { %s223_s13 = sshll.u32 %s393_s21, 4  ;;  %234 = sbr.rel (%p945_p11) target bundleno = 266 (0x10a), region = 36  ;;  %s224_s13 = int_to_ptr.hbm [resolvable:$true] %s223_s13 }
  0x36   : > { %521 = dma.hbm_to_vmem [thread:$0]  (!%p519_p13), %s224_s13, 128, %s226_s4, %s210_s27  }
  0x3a   : > { %773 = dma.done.wait (%p917_p1), [#allocation6], 16  }
  0x3b   : > { %775 = vsyncadd (%p917_p1), [#allocation6], 4294967280  ;;  %s241_s0 = sand.u32 1, %s806_s19  }
  0x3c   : > { %s478_s2 = sshll.u32 %s241_s0, 3  ;;  %s242_s3 = scalar_lea.sflag [#allocation4], %s241_s0 }
  0x3d   : > { %s245_s15 = scalar_lea.vmem [#allocation7], %s478_s2 }
  0x3e   : > { %777 = dma.done.wait (%p926_p3), %s242_s3, 128  }
  0x3f   : > { %779 = vsyncadd (%p926_p3), %s242_s3, 4294967168 }
  0x40   : > { %781 = dma.done.wait (%p917_p1), [#allocation9], 256  }
  0x41   : > { %783 = vsyncadd (%p917_p1), [#allocation9], 4294967040 }
  0x42   : > { %256 = sfence }
  0x43   : > { %s1106_s4 = sld [smem:[#allocation16_spill]]  ;;  %s274_s21 = sand.u32 1, %s794_s16   ;;  %v498_v0 = vld [vmem:[#allocation8 + $0x8] sm:$0xff]  ;;  %v497_v1 = vld [vmem:[#allocation8] sm:$0xff]  ;;  %v280_v2 = vld [vmem:[%s245_s15] sm:$0xff]  ;;  %vm298_vm0 = vcmask 261120  }
  0x44   : > { %s1012_s22 = sshll.u32 %s274_s21, 3  ;;  %308 = vmatpush.bf16.msra.mxu0 %v498_v0  ;;  %v281_v3 = vpack.c.bf16 %v280_v2, %v280_v2 }
  0x45   : > { %s276_s28 = scalar_lea.vmem [#allocation10], %s1012_s22 }
  0x48   : > { %309 = vmatpush.bf16.msra.mxu0 %v497_v1 }
  0x49   : > { %s279_s29 = sld [smem:[#allocation3 + %s1106_s4]]  ;;  %p490_p1 = scmp.ne.s32.totalorder %s1106_s4, 0 }
  0x4b   : > { %489 = vmatmul.msk.bf16.vlgmr.msra.gmra.mxu0 %vm298_vm0, %v281_v3 }
  0x4f   : > { %v315_v4 = vstv %s279_s29 }
  0xc8   : > { %v311_v5 = vpop.f32.mrf.mxu0 }
  0xc9   : > { %v316_v6 = vmul.f32 %v315_v4, %v311_v5 }
  0xcc   : > { %320 = sbr.rel (%p490_p1) target bundleno = 210 (0xd2), region = 52 }
  0xd0   : > { %v313_v7 = vpop.f32.mrf.mxu0 }
  0xd1   : > { %321 = vst [vmem:[#allocation2] sm:$0xff] %v316_v6 }
  0xd2 PF: > { %s1107_s30 = sld [smem:[#allocation16_spill]] }
  0xd8   : > { %p491_p3 = scmp.le.s32.totalorder %s1107_s30, 0 }
  0xda   : > { %325 = sbr.rel (%p491_p3) target bundleno = 227 (0xe3), region = 56 }
  0xdf   : > { %v326_v8 = vld [vmem:[#allocation2] sm:$0xff] }
  0xe0   : > { %v327_v9 = vadd.f32 %v326_v8, %v316_v6 }
  0xe2   : > { %328 = vst [vmem:[#allocation2] sm:$0xff] %v327_v9 }
  0xe3 PF: > { %s1108_s5 = sld [smem:[#allocation16_spill]] }
  0xe9   : > { %p492_p11 = scmp.ne.s32.totalorder %s1108_s5, 3 }
  0xea   : > { %s1109_s14 = sld [smem:[#allocation23_spill]] (!%p492_p11) }
  0xeb   : > { %332 = sbr.rel (%p492_p11) target bundleno = 245 (0xf5), region = 60 }
  0xf0   : > { %v333_v10 = vld [vmem:[#allocation2] sm:$0xff] }
  0xf1   : > { %v624_v11 = vld [vmem:[%s1109_s14] ss:$0 sm:$0xff] }
  0xf2   : > { %v338_v12 = vadd.f32 %v624_v11, %v333_v10 }
  0xf4   : > { %339 = vst [vmem:[%s276_s28] sm:$0xff] %v338_v12 }
  0xf5 PF: > { %s1110_s18 = sld [smem:[#allocation17_spill]]  ;;  %s354_s2 = sshll.u32 %s276_s28, 4  ;;  %s355_s2 = int_to_ptr.vmem [resolvable:$true] %s354_s2 }
  0xf6   : > { %s1112_s27 = sld [smem:[#allocation24_spill]]  ;;  %s341_s15 = scalar_lea.sflag [#allocation5], %s274_s21 }
  0xfb   : > { %s494_s7 = sshll.u32 %s1110_s18, 3 }
  0xfc   : > { %s352_s0 = scalar_lea.hbm %s1112_s27, %s494_s7  ;;  %s720_s5 = scalar_lea.hbm %s1112_s27, 16 }
  0xfd   : > { %s356_s3 = sshll.u32 %s352_s0, 4  ;;  %s357_s3 = int_to_ptr.hbm [resolvable:$true] %s356_s3 }
  0xfe   : > { %s714_s4 = sshra.s32 %s357_s3, 4  ;;  %s715_s4 = int_to_ptr.hbm [resolvable:$true] %s714_s4 }
  0xff   : > { %s716_s22 = scalar_lea.hbm %s715_s4, 8  ;;  %p721_p5 = scmp.lt.s32.totalorder %s715_s4, %s1112_s27 }
 0x100   : > { %p717_p0 = scmp.ne.s32.totalorder %s715_s4, %s716_s22  ;;  %p722_p6 = scmp.lt.s32.totalorder %s720_s5, %s716_s22 }
 0x102   : > { %p718_p2 = pnand %p717_p0, %p932_p7  ;;  %p723_p8 = por %p722_p6, %p721_p5 }
 0x104   : > { %p719_p4 = pneg %p718_p2 }
 0x106   : > { %p724_p10 = pnand %p723_p8, %p719_p4 }
 0x108   : > { %727 = shalt.err (!%p724_p10)
}
 0x109   : > { %509 = dma.vmem_to_hbm [thread:$0]  (%p932_p7), %s355_s2, 128, %s357_s3, %s341_s15  }
 0x10a PF: > { %s1113_s21 = sld [smem:[#allocation15_spill]]  ;;  %p531_p12 = scmp.ge.s32.totalorder %s830_s25, 2 }
 0x10c   : > { %p523_p13 = pnand %p531_p12, %p937_p9 }
 0x10e   : > { %p524_p1 = pneg %p523_p13 }
 0x110   : > { %s368_s14 = sand.u32 1, %s1113_s21  }
 0x111   : > { %s369_s18 = scalar_lea.sflag [#allocation5], %s368_s14 }
 0x112   : > { %785 = dma.done.wait (%p524_p1), %s369_s18, 128  }
 0x113   : > { %787 = vsyncadd (%p524_p1), %s369_s18, 4294967168  ;;  %s22_s25 = sadd.s32 1, %s830_s25   ;;  %s1115_s26 = sld [smem:[#allocation20_spill]] }
 0x114   : > { %p19_p3 = scmp.ge.s32.totalorder %s22_s25, 10   ;;  %s1116_s15 = smov %s794_s16 }
 0x115   : > { %s1117_s16 = smov %s798_s17  ;;  %s1118_s17 = smov %s981_s8 }
 0x116   : > { %s1119_s18 = smov %s806_s19  ;;  %s1120_s19 = smov %s810_s20 }
 0x117   : > { %s1121_s20 = smov %s984_s12  ;;  %s1122_s21 = smov %s822_s23 }
 0x118   : > { %s1123_s22 = smov %s826_s24  ;;  %s1125_s24 = smov %s1131_s11 }
 0x119   : > { %s1124_s23 = smov %s1115_s26  ;;  %21 = sbr.rel (!%p19_p3) target bundleno = 16 (0x10), region = 102 }
 0x11e   :  { %375 = vsyncpa [#allocation4], 1 }
 0x11f   :  { %377 = vsyncpa [#allocation4 + $0x1], 1 }
 0x120   :  { %378 = vsyncpa [#allocation9], 1 }
 0x121   :  { %379 = vsyncpa [#allocation5], 1 }
 0x122   :  { %381 = vsyncpa [#allocation5 + $0x1], 1 }
 0x123   :  { %382 = vsyncpa [#allocation6], 1 }
 0x124   :  { %384 = vsyncpa [#allocation6 + $0x1], 1 }

</bundles_post_ra>
